<compile_context>
chip_gen: v5e
topology: v5e:2x2
jax: 0.10.0
libtpu: 0.0.40
codegen_flags: <defaults>
</compile_context>

<pallas_src>
import functools

import jax
import jax.numpy as jnp
import numpy as np
from jax.experimental import pallas as pl
from jax.experimental.pallas import tpu as pltpu

_VMEM_LIMIT = 32 * 1024 * 1024  # safe scoped-VMEM budget on v5e/v6e/v7x


# ----------------------------------------------------------------------------
# Fused kernel: one batch element per grid step.
#   x_ref   : (1, T, E)   input slab for this batch element
#   wc_ref  : (C, T)      Linformer compression weights (already sliced to T)
#   wq_ref  : (E, E)      q projection, pre-transposed to (in, out), scaling folded
#   bq_ref  : (1, E)      q bias (scaling folded)
#   wkv_ref : (E, 2E)     [Wk^T | Wv^T]
#   bkv_ref : (1, 2E)     [bk | bv]
#   wo_ref  : (E, E)      output projection, pre-transposed
#   bo_ref  : (1, E)
#   o_ref   : (1, T, E)
# ----------------------------------------------------------------------------
def _fused_linformer_kernel(x_ref, wc_ref, wq_ref, bq_ref, wkv_ref, bkv_ref,
                            wo_ref, bo_ref, o_ref, *, num_heads, head_dim):
    E = num_heads * head_dim
    x = x_ref[0]                                                  # (T, E)

    # q projection (scaling already folded into wq / bq)
    q = jnp.dot(x, wq_ref[...], preferred_element_type=jnp.float32) + bq_ref[...]

    # Linformer compression along time: comp (C, E) = Wc (C, T) @ x (T, E)
    comp = jnp.dot(wc_ref[...], x, preferred_element_type=jnp.float32)

    # fused K / V projections: kv (C, 2E) = [k | v]
    kv = (jnp.dot(comp, wkv_ref[...], preferred_element_type=jnp.float32)
          + bkv_ref[...])

    # per-head attention with the output projection folded per head:
    #   out = sum_h softmax(q_h k_h^T) v_h @ Wo_t[h*hd:(h+1)*hd, :] + bo
    acc = None
    for h in range(num_heads):
        lo = h * head_dim
        hi = lo + head_dim
        qh = q[:, lo:hi]                                          # (T, hd)
        kh = kv[:, lo:hi]                                         # (C, hd)
        vh = kv[:, E + lo:E + hi]                                 # (C, hd)
        # s[t, c] = sum_d qh[t, d] * kh[c, d]
        s = jax.lax.dot_general(qh, kh, (((1,), (1,)), ((), ())),
                                preferred_element_type=jnp.float32)  # (T, C)
        s = s - jnp.max(s, axis=-1, keepdims=True)
        p = jnp.exp(s)
        p = p * pl.reciprocal(jnp.sum(p, axis=-1, keepdims=True), approx=False)
        # TODO(synk): attention-weight dropout omitted (eval-mode identity semantics)
        ah = jnp.dot(p, vh, preferred_element_type=jnp.float32)      # (T, hd)
        part = jnp.dot(ah, wo_ref[lo:hi, :],
                       preferred_element_type=jnp.float32)            # (T, E)
        acc = part if acc is None else acc + part

    o_ref[0] = (acc + bo_ref[...]).astype(o_ref.dtype)


def fused_linformer_attention(x_bte, w_c, wq_t, bq, wkv_t, bkv, wo_t, bo,
                              *, num_heads):
    """x_bte: (B, T, E) -> (B, T, E). All weights pre-transposed to (in, out)."""
    B, T, E = x_bte.shape
    C = w_c.shape[0]
    head_dim = E // num_heads
    kernel = functools.partial(_fused_linformer_kernel,
                               num_heads=num_heads, head_dim=head_dim)
    return pl.pallas_call(
        kernel,
        out_shape=jax.ShapeDtypeStruct((B, T, E), x_bte.dtype),
        grid=(B,),
        in_specs=[
            pl.BlockSpec((1, T, E), lambda b: (b, 0, 0)),   # per-batch slab
            pl.BlockSpec((C, T), lambda b: (0, 0)),          # weights: constant
            pl.BlockSpec((E, E), lambda b: (0, 0)),          # index maps => DMA'd
            pl.BlockSpec((1, E), lambda b: (0, 0)),          # once, reused across
            pl.BlockSpec((E, 2 * E), lambda b: (0, 0)),      # all grid steps
            pl.BlockSpec((1, 2 * E), lambda b: (0, 0)),
            pl.BlockSpec((E, E), lambda b: (0, 0)),
            pl.BlockSpec((1, E), lambda b: (0, 0)),
        ],
        out_specs=pl.BlockSpec((1, T, E), lambda b: (b, 0, 0)),
        compiler_params=pltpu.CompilerParams(
            dimension_semantics=("parallel",),
            vmem_limit_bytes=_VMEM_LIMIT,
        ),
    )(x_bte, w_c, wq_t, bq.reshape(1, E), wkv_t, bkv.reshape(1, 2 * E),
      wo_t, bo.reshape(1, E))


# ----------------------------------------------------------------------------
# Module: MultiheadLinearAttention forward (Linformer)
# ----------------------------------------------------------------------------
class MultiheadLinearAttentionPallas:
    def __init__(self, embed_dim, num_heads, max_seq_len, compressed_len,
                 scaling=0.125, key=jax.random.PRNGKey(0)):
        assert embed_dim % num_heads == 0
        self.embed_dim = embed_dim
        self.num_heads = num_heads
        self.head_dim = embed_dim // num_heads
        self.scaling = scaling

        ks = jax.random.split(key, 9)

        def init_w(k, shape, fan_in):
            lim = 1.0 / np.sqrt(fan_in)
            return jax.random.uniform(k, shape, jnp.float32, -lim, lim)

        E = embed_dim
        # PyTorch-convention parameters (nn.Linear weight: (out, in)); used by the reference.
        self.w_q = init_w(ks[0], (E, E), E); self.b_q = init_w(ks[1], (E,), E)
        self.w_k = init_w(ks[2], (E, E), E); self.b_k = init_w(ks[3], (E,), E)
        self.w_v = init_w(ks[4], (E, E), E); self.b_v = init_w(ks[5], (E,), E)
        self.w_o = init_w(ks[6], (E, E), E); self.b_o = init_w(ks[7], (E,), E)
        # compress_layer: nn.Linear(max_seq_len, compressed_len, bias=False)
        self.w_compress = init_w(ks[8], (compressed_len, max_seq_len), max_seq_len)

        # Kernel-side parameters: pre-transposed to (in, out), one-time host cost.
        # q-scaling (exact power of two) folded into the q projection parameters.
        self.wq_t = (self.w_q * scaling).T
        self.bq_s = self.b_q * scaling
        self.wkv_t = jnp.concatenate([self.w_k.T, self.w_v.T], axis=1)  # (E, 2E)
        self.bkv = jnp.concatenate([self.b_k, self.b_v])                # (2E,)
        self.wo_t = self.w_o.T

    def __call__(self, query, key_padding_mask):
        # query: (T, B, E); key_padding_mask: (B, S) -- only shape-checked,
        # exactly as in the PyTorch module (it never applies the mask).
        T, B, E = query.shape
        mB, _ = key_padding_mask.shape
        assert E == self.embed_dim
        assert B == mB, "query and key_padding_mask batch sizes differed"

        w_c = self.w_compress[:, :T]                  # (C, T)
        x_bte = jnp.transpose(query, (1, 0, 2))       # (B, T, E)
        out_bte = fused_linformer_attention(
            x_bte, w_c, self.wq_t, self.bq_s, self.wkv_t, self.bkv,
            self.wo_t, self.b_o, num_heads=self.num_heads)
        return jnp.transpose(out_bte, (1, 0, 2))      # (T, B, E)

    # Plain-JAX reference (mathematical spec, original weight orientation)
    def reference(self, query, key_padding_mask):
        T, B, E = query.shape
        H, hd = self.num_heads, self.head_dim
        q = query.reshape(T * B, E) @ self.w_q.T + self.b_q
        q = q.reshape(T, B, E) * self.scaling
        w_c = self.w_compress[:, :T]
        C = w_c.shape[0]
        x_bet = jnp.transpose(query, (1, 2, 0))                  # (B, E, T)
        comp = jnp.einsum("bet,ct->bec", x_bet, w_c)             # (B, E, C)
        kv_in = jnp.transpose(comp, (2, 0, 1))                   # (C, B, E)
        k = kv_in.reshape(C * B, E) @ self.w_k.T + self.b_k
        v = kv_in.reshape(C * B, E) @ self.w_v.T + self.b_v
        k = k.reshape(C, B, E); v = v.reshape(C, B, E)
        qh = jnp.transpose(q.reshape(T, B * H, hd), (1, 0, 2))
        kh = jnp.transpose(k.reshape(C, B * H, hd), (1, 0, 2))
        vh = jnp.transpose(v.reshape(C, B * H, hd), (1, 0, 2))
        s = jnp.einsum("btd,bcd->btc", qh, kh)
        p = jax.nn.softmax(s.astype(jnp.float32), axis=-1)
        a = jnp.einsum("btc,bcd->btd", p, vh)
        a = jnp.transpose(a, (1, 0, 2)).reshape(T, B, E)
        return (a.reshape(T * B, E) @ self.w_o.T + self.b_o).reshape(T, B, E)


if __name__ == "__main__":
    # Small shapes: T=8 timesteps, B=2 batch, E=32 embed, 4 heads (head_dim=8),
    # Linformer compression max_seq_len=16 -> compressed_len=4.
    T, B, E, H = 8, 2, 32, 4
    max_seq_len, compressed_len = 16, 4

    key = jax.random.PRNGKey(0)
    k_mod, k_q, k_m = jax.random.split(key, 3)

    module = MultiheadLinearAttentionPallas(
        embed_dim=E, num_heads=H, max_seq_len=max_seq_len,
        compressed_len=compressed_len, scaling=0.125, key=k_mod)

    query = jax.random.normal(k_q, (T, B, E), jnp.float32)
    key_padding_mask = (jax.random.uniform(k_m, (B, T)) > 0.8).astype(jnp.int32)

    out = module(query, key_padding_mask)
    out = jax.block_until_ready(out)

    ref = module.reference(query, key_padding_mask)
    assert out.shape == (T, B, E)
    np.testing.assert_allclose(np.asarray(out), np.asarray(ref), rtol=2e-5, atol=2e-5)
    print("KERNEL_OK")
</pallas_src>

<mosaic_0001>
module attributes {stable_mosaic.version = 11 : i64} {
  func.func @_fused_linformer_kernel(%arg0: i32, %arg1: memref<1x8x32xf32, #tpu.memory_space<vmem>>, %arg2: memref<4x8xf32, #tpu.memory_space<vmem>>, %arg3: memref<32x32xf32, #tpu.memory_space<vmem>>, %arg4: memref<1x32xf32, #tpu.memory_space<vmem>>, %arg5: memref<32x64xf32, #tpu.memory_space<vmem>>, %arg6: memref<1x64xf32, #tpu.memory_space<vmem>>, %arg7: memref<32x32xf32, #tpu.memory_space<vmem>>, %arg8: memref<1x32xf32, #tpu.memory_space<vmem>>, %arg9: memref<1x8x32xf32, #tpu.memory_space<vmem>>) attributes {dimension_semantics = [#tpu.dimension_semantics<parallel>], iteration_bounds = array<i64: 2>, scalar_prefetch = 0 : i64, scratch_operands = 0 : i64, tpu.core_type = #tpu.core_type<tc>, window_params = [{transform_indices = @transform_0, window_bounds = array<i64: 1, 8, 32>}, {pipeline_mode = #tpu.pipeline_mode<synchronous>, transform_indices = @transform_1, window_bounds = array<i64: 4, 8>}, {pipeline_mode = #tpu.pipeline_mode<synchronous>, transform_indices = @transform_2, window_bounds = array<i64: 32, 32>}, {pipeline_mode = #tpu.pipeline_mode<synchronous>, transform_indices = @transform_3, window_bounds = array<i64: 1, 32>}, {pipeline_mode = #tpu.pipeline_mode<synchronous>, transform_indices = @transform_4, window_bounds = array<i64: 32, 64>}, {pipeline_mode = #tpu.pipeline_mode<synchronous>, transform_indices = @transform_5, window_bounds = array<i64: 1, 64>}, {pipeline_mode = #tpu.pipeline_mode<synchronous>, transform_indices = @transform_6, window_bounds = array<i64: 32, 32>}, {pipeline_mode = #tpu.pipeline_mode<synchronous>, transform_indices = @transform_7, window_bounds = array<i64: 1, 32>}, {transform_indices = @transform_8, window_bounds = array<i64: 1, 8, 32>}]} {
    %c0 = arith.constant 0 : index
    %c0_0 = arith.constant 0 : index
    %c0_1 = arith.constant 0 : index
    %0 = vector.load %arg1[%c0, %c0_0, %c0_1] : memref<1x8x32xf32, #tpu.memory_space<vmem>>, vector<1x8x32xf32>
    %1 = vector.shape_cast %0 : vector<1x8x32xf32> to vector<8x32xf32>
    %c0_2 = arith.constant 0 : index
    %c0_3 = arith.constant 0 : index
    %2 = vector.load %arg3[%c0_2, %c0_3] : memref<32x32xf32, #tpu.memory_space<vmem>>, vector<32x32xf32>
    %cst = arith.constant dense<0.000000e+00> : vector<8x32xf32>
    %3 = tpu.matmul %1, %2, %cst {dimension_numbers = #tpu.dot_dimension_numbers<[1], [0], [0], [1], [0, 0, 1, 1], [], []>} : vector<8x32xf32>, vector<32x32xf32>, vector<8x32xf32> -> vector<8x32xf32>
    %c0_4 = arith.constant 0 : index
    %c0_5 = arith.constant 0 : index
    %4 = vector.load %arg4[%c0_4, %c0_5] : memref<1x32xf32, #tpu.memory_space<vmem>>, vector<1x32xf32>
    %5 = vector.broadcast %4 : vector<1x32xf32> to vector<8x32xf32>
    %6 = arith.addf %3, %5 : vector<8x32xf32>
    %c0_6 = arith.constant 0 : index
    %c0_7 = arith.constant 0 : index
    %7 = vector.load %arg2[%c0_6, %c0_7] : memref<4x8xf32, #tpu.memory_space<vmem>>, vector<4x8xf32>
    %cst_8 = arith.constant dense<0.000000e+00> : vector<4x32xf32>
    %8 = tpu.matmul %7, %1, %cst_8 {dimension_numbers = #tpu.dot_dimension_numbers<[1], [0], [0], [1], [0, 0, 1, 1], [], []>} : vector<4x8xf32>, vector<8x32xf32>, vector<4x32xf32> -> vector<4x32xf32>
    %c0_9 = arith.constant 0 : index
    %c0_10 = arith.constant 0 : index
    %9 = vector.load %arg5[%c0_9, %c0_10] : memref<32x64xf32, #tpu.memory_space<vmem>>, vector<32x64xf32>
    %cst_11 = arith.constant dense<0.000000e+00> : vector<4x64xf32>
    %10 = tpu.matmul %8, %9, %cst_11 {dimension_numbers = #tpu.dot_dimension_numbers<[1], [0], [0], [1], [0, 0, 1, 1], [], []>} : vector<4x32xf32>, vector<32x64xf32>, vector<4x64xf32> -> vector<4x64xf32>
    %c0_12 = arith.constant 0 : index
    %c0_13 = arith.constant 0 : index
    %11 = vector.load %arg6[%c0_12, %c0_13] : memref<1x64xf32, #tpu.memory_space<vmem>>, vector<1x64xf32>
    %12 = vector.broadcast %11 : vector<1x64xf32> to vector<4x64xf32>
    %13 = arith.addf %10, %12 : vector<4x64xf32>
    %14 = vector.extract_strided_slice %6 {offsets = [0, 0], sizes = [8, 8], strides = [1, 1]} : vector<8x32xf32> to vector<8x8xf32>
    %15 = vector.extract_strided_slice %13 {offsets = [0, 0], sizes = [4, 8], strides = [1, 1]} : vector<4x64xf32> to vector<4x8xf32>
    %16 = vector.extract_strided_slice %13 {offsets = [0, 32], sizes = [4, 8], strides = [1, 1]} : vector<4x64xf32> to vector<4x8xf32>
    %cst_14 = arith.constant dense<0.000000e+00> : vector<8x4xf32>
    %17 = tpu.matmul %14, %15, %cst_14 {dimension_numbers = #tpu.dot_dimension_numbers<[1], [1], [0], [0], [0, 0, 1, 0], [], []>} : vector<8x8xf32>, vector<4x8xf32>, vector<8x4xf32> -> vector<8x4xf32>
    %cst_15 = arith.constant dense<0xFF800000> : vector<8xf32>
    %18 = vector.multi_reduction <maximumf>, %17, %cst_15 [1] : vector<8x4xf32> to vector<8xf32>
    %19 = vector.shape_cast %18 : vector<8xf32> to vector<8x1xf32>
    %20 = vector.broadcast %19 : vector<8x1xf32> to vector<8x4xf32>
    %21 = arith.subf %17, %20 : vector<8x4xf32>
    %22 = math.exp %21 : vector<8x4xf32>
    %cst_16 = arith.constant dense<0.000000e+00> : vector<8xf32>
    %23 = vector.multi_reduction <add>, %22, %cst_16 [1] : vector<8x4xf32> to vector<8xf32>
    %24 = vector.shape_cast %23 : vector<8xf32> to vector<8x1xf32>
    %25 = tpu.reciprocal %24 : vector<8x1xf32> -> vector<8x1xf32>
    %26 = vector.broadcast %25 : vector<8x1xf32> to vector<8x4xf32>
    %27 = arith.mulf %22, %26 : vector<8x4xf32>
    %cst_17 = arith.constant dense<0.000000e+00> : vector<8x8xf32>
    %28 = tpu.matmul %27, %16, %cst_17 {dimension_numbers = #tpu.dot_dimension_numbers<[1], [0], [0], [1], [0, 0, 1, 1], [], []>} : vector<8x4xf32>, vector<4x8xf32>, vector<8x8xf32> -> vector<8x8xf32>
    %c0_18 = arith.constant 0 : index
    %c0_19 = arith.constant 0 : index
    %29 = vector.load %arg7[%c0_18, %c0_19] : memref<32x32xf32, #tpu.memory_space<vmem>>, vector<8x32xf32>
    %cst_20 = arith.constant dense<0.000000e+00> : vector<8x32xf32>
    %30 = tpu.matmul %28, %29, %cst_20 {dimension_numbers = #tpu.dot_dimension_numbers<[1], [0], [0], [1], [0, 0, 1, 1], [], []>} : vector<8x8xf32>, vector<8x32xf32>, vector<8x32xf32> -> vector<8x32xf32>
    %31 = vector.extract_strided_slice %6 {offsets = [0, 8], sizes = [8, 8], strides = [1, 1]} : vector<8x32xf32> to vector<8x8xf32>
    %32 = vector.extract_strided_slice %13 {offsets = [0, 8], sizes = [4, 8], strides = [1, 1]} : vector<4x64xf32> to vector<4x8xf32>
    %33 = vector.extract_strided_slice %13 {offsets = [0, 40], sizes = [4, 8], strides = [1, 1]} : vector<4x64xf32> to vector<4x8xf32>
    %cst_21 = arith.constant dense<0.000000e+00> : vector<8x4xf32>
    %34 = tpu.matmul %31, %32, %cst_21 {dimension_numbers = #tpu.dot_dimension_numbers<[1], [1], [0], [0], [0, 0, 1, 0], [], []>} : vector<8x8xf32>, vector<4x8xf32>, vector<8x4xf32> -> vector<8x4xf32>
    %cst_22 = arith.constant dense<0xFF800000> : vector<8xf32>
    %35 = vector.multi_reduction <maximumf>, %34, %cst_22 [1] : vector<8x4xf32> to vector<8xf32>
    %36 = vector.shape_cast %35 : vector<8xf32> to vector<8x1xf32>
    %37 = vector.broadcast %36 : vector<8x1xf32> to vector<8x4xf32>
    %38 = arith.subf %34, %37 : vector<8x4xf32>
    %39 = math.exp %38 : vector<8x4xf32>
    %cst_23 = arith.constant dense<0.000000e+00> : vector<8xf32>
    %40 = vector.multi_reduction <add>, %39, %cst_23 [1] : vector<8x4xf32> to vector<8xf32>
    %41 = vector.shape_cast %40 : vector<8xf32> to vector<8x1xf32>
    %42 = tpu.reciprocal %41 : vector<8x1xf32> -> vector<8x1xf32>
    %43 = vector.broadcast %42 : vector<8x1xf32> to vector<8x4xf32>
    %44 = arith.mulf %39, %43 : vector<8x4xf32>
    %cst_24 = arith.constant dense<0.000000e+00> : vector<8x8xf32>
    %45 = tpu.matmul %44, %33, %cst_24 {dimension_numbers = #tpu.dot_dimension_numbers<[1], [0], [0], [1], [0, 0, 1, 1], [], []>} : vector<8x4xf32>, vector<4x8xf32>, vector<8x8xf32> -> vector<8x8xf32>
    %c8 = arith.constant 8 : index
    %c0_25 = arith.constant 0 : index
    %46 = vector.load %arg7[%c8, %c0_25] : memref<32x32xf32, #tpu.memory_space<vmem>>, vector<8x32xf32>
    %cst_26 = arith.constant dense<0.000000e+00> : vector<8x32xf32>
    %47 = tpu.matmul %45, %46, %cst_26 {dimension_numbers = #tpu.dot_dimension_numbers<[1], [0], [0], [1], [0, 0, 1, 1], [], []>} : vector<8x8xf32>, vector<8x32xf32>, vector<8x32xf32> -> vector<8x32xf32>
    %48 = arith.addf %30, %47 : vector<8x32xf32>
    %49 = vector.extract_strided_slice %6 {offsets = [0, 16], sizes = [8, 8], strides = [1, 1]} : vector<8x32xf32> to vector<8x8xf32>
    %50 = vector.extract_strided_slice %13 {offsets = [0, 16], sizes = [4, 8], strides = [1, 1]} : vector<4x64xf32> to vector<4x8xf32>
    %51 = vector.extract_strided_slice %13 {offsets = [0, 48], sizes = [4, 8], strides = [1, 1]} : vector<4x64xf32> to vector<4x8xf32>
    %cst_27 = arith.constant dense<0.000000e+00> : vector<8x4xf32>
    %52 = tpu.matmul %49, %50, %cst_27 {dimension_numbers = #tpu.dot_dimension_numbers<[1], [1], [0], [0], [0, 0, 1, 0], [], []>} : vector<8x8xf32>, vector<4x8xf32>, vector<8x4xf32> -> vector<8x4xf32>
    %cst_28 = arith.constant dense<0xFF800000> : vector<8xf32>
    %53 = vector.multi_reduction <maximumf>, %52, %cst_28 [1] : vector<8x4xf32> to vector<8xf32>
    %54 = vector.shape_cast %53 : vector<8xf32> to vector<8x1xf32>
    %55 = vector.broadcast %54 : vector<8x1xf32> to vector<8x4xf32>
    %56 = arith.subf %52, %55 : vector<8x4xf32>
    %57 = math.exp %56 : vector<8x4xf32>
    %cst_29 = arith.constant dense<0.000000e+00> : vector<8xf32>
    %58 = vector.multi_reduction <add>, %57, %cst_29 [1] : vector<8x4xf32> to vector<8xf32>
    %59 = vector.shape_cast %58 : vector<8xf32> to vector<8x1xf32>
    %60 = tpu.reciprocal %59 : vector<8x1xf32> -> vector<8x1xf32>
    %61 = vector.broadcast %60 : vector<8x1xf32> to vector<8x4xf32>
    %62 = arith.mulf %57, %61 : vector<8x4xf32>
    %cst_30 = arith.constant dense<0.000000e+00> : vector<8x8xf32>
    %63 = tpu.matmul %62, %51, %cst_30 {dimension_numbers = #tpu.dot_dimension_numbers<[1], [0], [0], [1], [0, 0, 1, 1], [], []>} : vector<8x4xf32>, vector<4x8xf32>, vector<8x8xf32> -> vector<8x8xf32>
    %c16 = arith.constant 16 : index
    %c0_31 = arith.constant 0 : index
    %64 = vector.load %arg7[%c16, %c0_31] : memref<32x32xf32, #tpu.memory_space<vmem>>, vector<8x32xf32>
    %cst_32 = arith.constant dense<0.000000e+00> : vector<8x32xf32>
    %65 = tpu.matmul %63, %64, %cst_32 {dimension_numbers = #tpu.dot_dimension_numbers<[1], [0], [0], [1], [0, 0, 1, 1], [], []>} : vector<8x8xf32>, vector<8x32xf32>, vector<8x32xf32> -> vector<8x32xf32>
    %66 = arith.addf %48, %65 : vector<8x32xf32>
    %67 = vector.extract_strided_slice %6 {offsets = [0, 24], sizes = [8, 8], strides = [1, 1]} : vector<8x32xf32> to vector<8x8xf32>
    %68 = vector.extract_strided_slice %13 {offsets = [0, 24], sizes = [4, 8], strides = [1, 1]} : vector<4x64xf32> to vector<4x8xf32>
    %69 = vector.extract_strided_slice %13 {offsets = [0, 56], sizes = [4, 8], strides = [1, 1]} : vector<4x64xf32> to vector<4x8xf32>
    %cst_33 = arith.constant dense<0.000000e+00> : vector<8x4xf32>
    %70 = tpu.matmul %67, %68, %cst_33 {dimension_numbers = #tpu.dot_dimension_numbers<[1], [1], [0], [0], [0, 0, 1, 0], [], []>} : vector<8x8xf32>, vector<4x8xf32>, vector<8x4xf32> -> vector<8x4xf32>
    %cst_34 = arith.constant dense<0xFF800000> : vector<8xf32>
    %71 = vector.multi_reduction <maximumf>, %70, %cst_34 [1] : vector<8x4xf32> to vector<8xf32>
    %72 = vector.shape_cast %71 : vector<8xf32> to vector<8x1xf32>
    %73 = vector.broadcast %72 : vector<8x1xf32> to vector<8x4xf32>
    %74 = arith.subf %70, %73 : vector<8x4xf32>
    %75 = math.exp %74 : vector<8x4xf32>
    %cst_35 = arith.constant dense<0.000000e+00> : vector<8xf32>
    %76 = vector.multi_reduction <add>, %75, %cst_35 [1] : vector<8x4xf32> to vector<8xf32>
    %77 = vector.shape_cast %76 : vector<8xf32> to vector<8x1xf32>
    %78 = tpu.reciprocal %77 : vector<8x1xf32> -> vector<8x1xf32>
    %79 = vector.broadcast %78 : vector<8x1xf32> to vector<8x4xf32>
    %80 = arith.mulf %75, %79 : vector<8x4xf32>
    %cst_36 = arith.constant dense<0.000000e+00> : vector<8x8xf32>
    %81 = tpu.matmul %80, %69, %cst_36 {dimension_numbers = #tpu.dot_dimension_numbers<[1], [0], [0], [1], [0, 0, 1, 1], [], []>} : vector<8x4xf32>, vector<4x8xf32>, vector<8x8xf32> -> vector<8x8xf32>
    %c24 = arith.constant 24 : index
    %c0_37 = arith.constant 0 : index
    %82 = vector.load %arg7[%c24, %c0_37] : memref<32x32xf32, #tpu.memory_space<vmem>>, vector<8x32xf32>
    %cst_38 = arith.constant dense<0.000000e+00> : vector<8x32xf32>
    %83 = tpu.matmul %81, %82, %cst_38 {dimension_numbers = #tpu.dot_dimension_numbers<[1], [0], [0], [1], [0, 0, 1, 1], [], []>} : vector<8x8xf32>, vector<8x32xf32>, vector<8x32xf32> -> vector<8x32xf32>
    %84 = arith.addf %66, %83 : vector<8x32xf32>
    %c0_39 = arith.constant 0 : index
    %c0_40 = arith.constant 0 : index
    %85 = vector.load %arg8[%c0_39, %c0_40] : memref<1x32xf32, #tpu.memory_space<vmem>>, vector<1x32xf32>
    %86 = vector.broadcast %85 : vector<1x32xf32> to vector<8x32xf32>
    %87 = arith.addf %84, %86 : vector<8x32xf32>
    %c0_41 = arith.constant 0 : index
    %c0_42 = arith.constant 0 : index
    %c0_43 = arith.constant 0 : index
    %88 = vector.load %arg9[%c0_41, %c0_42, %c0_43] : memref<1x8x32xf32, #tpu.memory_space<vmem>>, vector<1x8x32xf32>
    %89 = vector.shape_cast %88 : vector<1x8x32xf32> to vector<8x32xf32>
    %90 = vector.shape_cast %87 : vector<8x32xf32> to vector<1x8x32xf32>
    tpu.vector_store %arg9[%c0_41, %c0_42, %c0_43], %90 {strides = array<i32>} : memref<1x8x32xf32, #tpu.memory_space<vmem>>, vector<1x8x32xf32>,
    return
  }
  func.func @transform_0(%arg0: i32) -> (i32, i32, i32) {
    %c0_i32 = arith.constant 0 : i32
    %c0_i32_0 = arith.constant 0 : i32
    %c0_i32_1 = arith.constant 0 : i32
    return %arg0, %c0_i32, %c0_i32_0 : i32, i32, i32
  }
  func.func @transform_1(%arg0: i32) -> (i32, i32) {
    %c0_i32 = arith.constant 0 : i32
    %c0_i32_0 = arith.constant 0 : i32
    %c0_i32_1 = arith.constant 0 : i32
    return %c0_i32, %c0_i32_0 : i32, i32
  }
  func.func @transform_2(%arg0: i32) -> (i32, i32) {
    %c0_i32 = arith.constant 0 : i32
    %c0_i32_0 = arith.constant 0 : i32
    %c0_i32_1 = arith.constant 0 : i32
    return %c0_i32, %c0_i32_0 : i32, i32
  }
  func.func @transform_3(%arg0: i32) -> (i32, i32) {
    %c0_i32 = arith.constant 0 : i32
    %c0_i32_0 = arith.constant 0 : i32
    %c0_i32_1 = arith.constant 0 : i32
    return %c0_i32, %c0_i32_0 : i32, i32
  }
  func.func @transform_4(%arg0: i32) -> (i32, i32) {
    %c0_i32 = arith.constant 0 : i32
    %c0_i32_0 = arith.constant 0 : i32
    %c0_i32_1 = arith.constant 0 : i32
    return %c0_i32, %c0_i32_0 : i32, i32
  }
  func.func @transform_5(%arg0: i32) -> (i32, i32) {
    %c0_i32 = arith.constant 0 : i32
    %c0_i32_0 = arith.constant 0 : i32
    %c0_i32_1 = arith.constant 0 : i32
    return %c0_i32, %c0_i32_0 : i32, i32
  }
  func.func @transform_6(%arg0: i32) -> (i32, i32) {
    %c0_i32 = arith.constant 0 : i32
    %c0_i32_0 = arith.constant 0 : i32
    %c0_i32_1 = arith.constant 0 : i32
    return %c0_i32, %c0_i32_0 : i32, i32
  }
  func.func @transform_7(%arg0: i32) -> (i32, i32) {
    %c0_i32 = arith.constant 0 : i32
    %c0_i32_0 = arith.constant 0 : i32
    %c0_i32_1 = arith.constant 0 : i32
    return %c0_i32, %c0_i32_0 : i32, i32
  }
  func.func @transform_8(%arg0: i32) -> (i32, i32, i32) {
    %c0_i32 = arith.constant 0 : i32
    %c0_i32_0 = arith.constant 0 : i32
    %c0_i32_1 = arith.constant 0 : i32
    return %arg0, %c0_i32, %c0_i32_0 : i32, i32, i32
  }
}

</mosaic_0001>

<bundles_post_ra>
// kernel: tpu_custom_call.1
= control target key start
LH: loop header
LB: loop body
LE: loop exit
PB: predicated region body
PF: predicated region fallthrough
CT: control target
= control target key end

     0   :  { %s1687_s0 = inlined_call_operand.hbm [shape: f32[2,8,32], index: 0, kind: input, shape index: {}]   ;;  %s1688_s1 = inlined_call_operand.hbm [shape: f32[4,8], index: 1, kind: input, shape index: {}]   ;;  %s1689_s2 = inlined_call_operand.hbm [shape: f32[32,32], index: 2, kind: input, shape index: {}]   ;;  %s1690_s3 = inlined_call_operand.vmem [shape: f32[1,32], index: 3, kind: input, shape index: {}]   ;;  %s1691_s4 = inlined_call_operand.hbm [shape: f32[32,64], index: 4, kind: input, shape index: {}]   ;;  %s1692_s5 = inlined_call_operand.vmem [shape: f32[1,64], index: 5, kind: input, shape index: {}]   ;;  %s1693_s6 = inlined_call_operand.hbm [shape: f32[32,32], index: 6, kind: input, shape index: {}]   ;;  %s1694_s7 = inlined_call_operand.vmem [shape: f32[1,32], index: 7, kind: input, shape index: {}]   ;;  %s1695_s8 = inlined_call_operand.hbm [shape: f32[2,8,32], index: 8, kind: output, shape index: {}]  }
   0x1   :  { %1696 = sst [smem:[#allocation16_spill]] %s1688_s1 }
   0x2   :  { %1697 = sst [smem:[#allocation17_spill]] %s1689_s2 }
   0x3   :  { %1698 = sst [smem:[#allocation18_spill]] %s1691_s4 }
   0x4   :  { %13 = vsyncpa [#allocation3], 0 }
   0x5   :  { %15 = vsyncpa [#allocation3 + $0x1], 0 }
   0x6   :  { %16 = vsyncpa [#allocation6], 0 }
   0x7   :  { %17 = vsyncpa [#allocation9], 0 }
   0x8   :  { %18 = vsyncpa [#allocation4], 0 }
   0x9   :  { %20 = vsyncpa [#allocation4 + $0x1], 0  ;;  %s1462_s27 = smov 0   ;;  %s1464_s28 = smov 0  }
   0xa   :  { %s1466_s29 = smov 0   ;;  %s1468_s30 = smov 0  }
   0xb LB: > { %s1699_s1 = sld [smem:[#allocation16_spill]]  ;;  %s1486_s12 = sadd.s32 4294967295, %s1402_s30   ;;  %s1402_s30 = sphi %s1468_s30, %s1713_s30   ;;  %s1398_s29 = sphi %s1466_s29, %s1712_s29   ;;  %s1394_s28 = sphi %s1464_s28, %s1711_s28   ;;  %s1390_s27 = sphi %s1462_s27, %s1710_s27  }
   0xc   : > { %p1021_p0 = scmp.ge.s32.totalorder %s1402_s30, 1  ;;  %p47_p1 = scmp.eq.s32.totalorder %s1486_s12, 0 }
   0xd   : > { %p230_p2 = scmp.lt.s32.totalorder %s1402_s30, 3  ;;  %s1404_s14 = smov [#allocation5]  }
   0xe   : > { %s244_s15 = sshll.u32 %s1404_s14, 4  ;;  %s1701_s4 = sld [smem:[#allocation18_spill]]  ;;  %s245_s15 = int_to_ptr.vmem [resolvable:$true] %s244_s15 }
   0xf   : > { %p1491_p3 = pnand %p1021_p0, %p230_p2  ;;  %s1703_s2 = sld [smem:[#allocation17_spill]] }
  0x10   : > { %s1405_s23 = smov [#allocation8]   ;;  %s1406_s25 = smov 128  }
  0x11   : > { %s242_s11 = sshll.u32 %s1699_s1, 4  ;;  %p1083_p5 = pneg %p1491_p3  ;;  %s243_s11 = int_to_ptr.hbm [resolvable:$true] %s242_s11 }
  0x12   : > { %s272_s24 = sshll.u32 %s1405_s23, 4  ;;  %s1407_s26 = smov 8   ;;  %s273_s24 = int_to_ptr.vmem [resolvable:$true] %s272_s24 }
  0x13   : > { %p1503_p6 = pnand %p1083_p5, %p47_p1  ;;  %s287_s14 = sshll.u32 %s1693_s6, 4  ;;  %s288_s14 = int_to_ptr.hbm [resolvable:$true] %s287_s14 }
  0x14   : > { %s270_s18 = sshll.u32 %s1701_s4, 4  ;;  %s1408_s16 = smov [#allocation7]   ;;  %s271_s18 = int_to_ptr.hbm [resolvable:$true] %s270_s18 }
  0x15   : > { %s253_s22 = sshll.u32 %s1703_s2, 4  ;;  %s1523_s20 = sadd.s32 1, %s1402_s30   ;;  %s254_s22 = int_to_ptr.hbm [resolvable:$true] %s253_s22 }
  0x16   : > { %1086 = dma.hbm_to_vmem [thread:$0]  (!%p1503_p6), %s243_s11, 64, %s245_s15, [#allocation6]  }
  0x17   : > { %1092 = dma.hbm_to_vmem [thread:$0]  (!%p1503_p6), %s271_s18, 512, %s273_s24, [#allocation9], %s1406_s25, %s1406_s25, %s1407_s26  }
  0x18   : > { %s255_s11 = sshll.u32 %s1408_s16, 4  ;;  %s1409_s15 = smov [#allocation10]   ;;  %s256_s11 = int_to_ptr.vmem [resolvable:$true] %s255_s11 }
  0x19   : > { %1089 = dma.hbm_to_vmem [thread:$0]  (!%p1503_p6), %s254_s22, 512, %s256_s11, [#allocation6], %s1406_s25, %s1406_s25, %s1407_s26  }
  0x1a   : > { %s289_s17 = sshll.u32 %s1409_s15, 4  ;;  %s1020_s18 = sadd.s32 4294967294, %s1402_s30   ;;  %s290_s17 = int_to_ptr.vmem [resolvable:$true] %s289_s17 }
  0x1b   : > { %1095 = dma.hbm_to_vmem [thread:$0]  (!%p1503_p6), %s288_s14, 512, %s290_s17, [#allocation9], %s1406_s25, %s1406_s25, %s1407_s26  }
  0x1c   : > { %s30_s21 = ssub.s32 %s1402_s30, %s1523_s20  ;;  %s33_s23 = sadd.s32 1, %s1398_s29 }
  0x1d   : > { %p31_p7 = scmp.eq.s32.totalorder %s30_s21, 0  ;;  %p40_p8 = scmp.ne.s32.totalorder %s1398_s29, %s1394_s28 }
  0x1e   : > { %p41_p9 = scmp.eq.s32.totalorder %s1402_s30, 0  ;;  %p46_p10 = scmp.ne.s32.totalorder %s1394_s28, %s1390_s27 }
  0x1f   : > { %s1534_s22 = scalar_select %p31_p7, %s1398_s29, %s33_s23  }
  0x20   : > { %p1536_p11 = por %p41_p9, %p40_p8  ;;  %p1542_p12 = por %p47_p1, %p46_p10 }
  0x21   : > { %p217_p13 = scmp.eq.s32.totalorder %s1486_s12, 1  ;;  %p223_p0 = scmp.eq.s32.totalorder %s1020_s18, 1 }
  0x22   : > { %p1108_p2 = scmp.lt.s32.totalorder %s1402_s30, 2  ;;  %s306_s25 = sand.u32 1, %s1398_s29  }
  0x23   : > { %p1549_p5 = por %p217_p13, %p40_p8  ;;  %p1553_p6 = por %p223_p0, %p46_p10 }
  0x24   : > { %s1027_s10 = sshll.u32 %s306_s25, 3  ;;  %s1028_s14 = sshll.u32 %s1402_s30, 3 }
  0x25   : > { %s314_s15 = scalar_lea.hbm %s1687_s0, %s1028_s14  ;;  %s310_s17 = scalar_lea.vmem [#allocation2], %s1027_s10 }
  0x26   : > { %s318_s21 = sshll.u32 %s310_s17, 4  ;;  %s316_s23 = sshll.u32 %s314_s15, 4  ;;  %s319_s21 = int_to_ptr.vmem [resolvable:$true] %s318_s21  ;;  %s317_s23 = int_to_ptr.hbm [resolvable:$true] %s316_s23 }
  0x27   : > { %p1563_p7 = pnand %p1108_p2, %p1536_p11  ;;  %s307_s1 = scalar_lea.sflag [#allocation3], %s306_s25 }
  0x28   : > { %s1298_s2 = sshra.s32 %s317_s23, 4  ;;  %s1305_s16 = scalar_lea.hbm %s1687_s0, 16  ;;  %s1299_s2 = int_to_ptr.hbm [resolvable:$true] %s1298_s2 }
  0x29   : > { %s1300_s4 = scalar_lea.hbm %s1299_s2, 8  ;;  %p1302_p9 = pneg %p1563_p7 }
  0x2a   : > { %p1301_p8 = scmp.ne.s32.totalorder %s1299_s2, %s1300_s4  ;;  %p1306_p11 = scmp.lt.s32.totalorder %s1299_s2, %s1687_s0 }
  0x2b   : > { %p1307_p0 = scmp.lt.s32.totalorder %s1305_s16, %s1300_s4 }
  0x2c   : > { %p1303_p10 = pnand %p1302_p9, %p1301_p8 }
  0x2d   : > { %p1308_p2 = por %p1307_p0, %p1306_p11 }
  0x2e   : > { %p1304_p13 = pneg %p1303_p10 }
  0x30   : > { %p1309_p4 = pnand %p1308_p2, %p1304_p13 }
  0x32   : > { %1312 = shalt.err (!%p1309_p4)
}
  0x33   : > { %1099 = dma.hbm_to_vmem [thread:$0]  (!%p1563_p7), %s317_s23, 128, %s319_s21, %s307_s1  }
  0x34   : > { %327 = sbr.rel (%p1491_p3) target bundleno = 1512 (0x5e8), region = 52  ;;  %s1580_s25 = sand.u32 (!%p1491_p3), 1, %s1394_s28  }
  0x35   : > { %s1030_s15 = sshll.u32 (!%p1491_p3), %s1580_s25, 3  ;;  %s330_s17 = scalar_lea.sflag (!%p1491_p3), [#allocation3], %s1580_s25 }
  0x36   : > { %s333_s2 = scalar_lea.vmem (!%p1491_p3), [#allocation2], %s1030_s15 }
  0x39   : > { %1373 = dma.done.wait (%p1542_p12), %s330_s17, 128  }
  0x3a   : > { %1375 = vsyncadd (%p1542_p12), %s330_s17, 4294967168 }
  0x3b   : > { %1377 = dma.done.wait (%p47_p1), [#allocation6], 576  }
  0x3c   : > { %1379 = vsyncadd (%p47_p1), [#allocation6], 4294966720 }
  0x3d   : > { %1381 = dma.done.wait (%p47_p1), [#allocation9], 1024  }
  0x3e   : > { %1383 = vsyncadd (%p47_p1), [#allocation9], 4294966272  ;;  %vm421_vm0 = vcmask 64512   ;;  %v387_v0 = vld [vmem:[%s333_s2] sm:$0xff]  ;;  %v420_v1 = vld [vmem:[#allocation5] sm:$0xf] }
  0x3f   : > { %v391_v2 = vld [vmem:[#allocation7 + $0x18] sm:$0xff]  ;;  %440 = vmatpush.msra.mxu1 %v387_v0  ;;  %v390_v3 = vld [vmem:[#allocation7 + $0x10] sm:$0xff]  ;;  %v389_v5 = vld [vmem:[#allocation7 + $0x8] sm:$0xff]  ;;  %vm396_vm1 = vcmask 261120   ;;  %s1410_s13 = smov 120   ;;  %s1411_s23 = smov 96  }
  0x40   : > { %412 = vmatpush.msra.mxu0 %v391_v2  ;;  %v448_v4 = vld [vmem:[#allocation8 + $0x18] sm:$0xff]  ;;  %1037 = vmatmul.msk.f32.vlgmr.msra.gmra.mxu1 %vm421_vm0, %v420_v1  ;;  %v447_v6 = vld [vmem:[#allocation8 + $0x10] sm:$0xff]  ;;  %v446_v7 = vld [vmem:[#allocation8 + $0x8] sm:$0xff]  ;;  %s1412_s18 = smov 112   ;;  %s1413_s10 = smov 104   ;;  %vm532_vm2 = vcmask 1043456  }
  0x41   : > { %468 = vmatpush.msra.mxu2 %v448_v4  ;;  %v388_v8 = vld [vmem:[#allocation7] sm:$0xff]  ;;  %v1159_v11 = vld [vmem:[%s1690_s3] ss:$0 sm:$0xff]  ;;  %vm502_vm3 = vcmask 31744   ;;  %s1414_s14 = smov 80   ;;  %s1415_s16 = smov 88  }
  0x42   : > { %413 = vmatpush.msra.mxu0 %v390_v3  ;;  %v445_v9 = vld [vmem:[#allocation8] sm:$0xff]  ;;  %v1160_v14 = vld [vmem:[%s1692_s5] ss:$0 sm:$0xff]  ;;  %s1416_s11 = smov 72   ;;  %s1060_s24 = sshll.u32 %s1486_s12, 3 }
  0x43   : > { %469 = vmatpush.msra.mxu2 %v447_v6  ;;  %v555_v30 = vld [vmem:[#allocation10] sm:$0xff]  ;;  %s907_s1 = scalar_lea.hbm %s1695_s8, %s1060_s24  ;;  %s386_s19 = scalar_lea.vmem [#allocation11], %s1030_s15 }
  0x44   : > { %414 = vmatpush.msra.mxu0 %v389_v5  ;;  %s909_s21 = sshll.u32 %s386_s19, 4  ;;  %s897_s12 = scalar_lea.sflag [#allocation4], %s1580_s25  ;;  %s910_s21 = int_to_ptr.vmem [resolvable:$true] %s909_s21 }
  0x45   : > { %470 = vmatpush.msra.mxu2 %v446_v7  ;;  %s1348_s15 = scalar_lea.hbm %s1695_s8, 16 }
  0x46   : > { %415 = vmatpush.msra.mxu0 %v388_v8 }
  0x47   : > { %1036 = vmatmul.msk.f32.vlgmr.msra.gmra.mxu0 %vm396_vm1, %v387_v0  ;;  %471 = vmatpush.msra.mxu2 %v445_v9 }
  0xbd   : > { %v442_v10 = vpop.f32.mrf.mxu1 }
  0xbe   : > { %1038 = vmatmul.msk.f32.vlgmr.msra.gmra.mxu2 %vm396_vm1, %v442_v10 }
  0xc4   : > { %v417_v12 = vpop.f32.mrf.mxu0 }
  0xc5   : > { %v418_v13 = vadd.f32 %v1159_v11, %v417_v12 }
  0xc7   : > { %556 = vrot.lane.b32.xlu2 %v418_v13, %s1410_s13 }
 0x121   : > { %v557_v17 = vpop.permute.xlu2 %556 }
 0x141   : > { %v473_v15 = vpop.f32.mrf.mxu2 }
 0x142   : > { %v1607_v16 = vadd.f32 %v1160_v14, %v473_v15 }
 0x144   : > { %527 = vrot.lane.b32.xlu1 %v1607_v16, %s1411_s23  ;;  %1039 = vmatpush.xpose.msk.msra.mxu3 %vm421_vm0, %v1607_v16  ;;  %s911_s23 = sshll.u32 %s907_s1, 4  ;;  %s912_s23 = int_to_ptr.hbm [resolvable:$true] %s911_s23 }
 0x145   : > { %684 = vrot.lane.b32.xlu2 %v1607_v16, %s1412_s18 }
 0x147   : > { %1040 = vmatmul.msk.f32.vlgmr.msra.gmra.mxu3 %vm421_vm0, %v418_v13 }
 0x14c   : > { %558 = vrot.lane.b32.xlu1 %v1607_v16, %s1410_s13 }
 0x14d   : > { %786 = vrot.lane.b32.xlu2 %v418_v13, %s1413_s10 }
 0x154   : > { %788 = vrot.lane.b32.xlu1 %v1607_v16, %s1413_s10 }
 0x19f   : > { %v685_v20 = vpop.permute.xlu2 %684 }
 0x1a7   : > { %v787_v51 = vpop.permute.xlu2 %786 }
 0x1b6   : > { %v528_v18 = vpop.permute.xlu1 %527 }
 0x1b7   : > { %1041 = vmatpush.msk.msrb.mxu1 %vm532_vm2, %v528_v18 }
 0x1b9   : > { %677 = vmatpush.msra.mxu1 %v555_v30  ;;  %v635_v30 = vld [vmem:[#allocation10 + $0x8] sm:$0xff] }
 0x1ba   : > { %654 = vmatpush.msrb.mxu2 %v635_v30 }
 0x1be   : > { %v559_v19 = vpop.permute.xlu1 %558 }
 0x1bf   : > { %1043 = vmatpush.xpose.msk.msrb.mxu3 %vm421_vm0, %v559_v19 }
 0x1c2   : > { %1044 = vmatmul.msk.f32.vlgmr.msrb.gmra.mxu3 %vm421_vm0, %v557_v17 }
 0x1c3   : > { %1049 = vmatpush.xpose.msk.msra.mxu3 %vm421_vm0, %v685_v20 }
 0x1c6   : > { %v789_v44 = vpop.permute.xlu1 %788 }
 0x1ca   : > { %v499_v21 = vpop.f32.mrf.mxu3 }
 0x1cb   : > { %v503_v22 = vsel %vm502_vm3, %v499_v21, -inf }
 0x1cc   : > { %504 = vmax.xlane.f32.xlu0 %v503_v22 }
 0x23f   : > { %v505_v23 = vpop.xlane.xlu0 %504 }
 0x240   : > { %v506_v24 = vsub.f32 %v499_v21, %v505_v23 }
 0x242   : > { %v507_v25 = vmul.f32 1.442695, %v506_v24 }
 0x244   : > { %1162 = vpow2.f32 %v507_v25 }
 0x245   : > { %v581_v26 = vpop.f32.mrf.mxu3 }
 0x246   : > { %v584_v27 = vsel %vm502_vm3, %v581_v26, -inf }
 0x247   : > { %585 = vmax.xlane.f32.xlu1 %v584_v27 }
 0x24a   : > { %v1163_v28 = vpop.eup %1162 }
 0x24b   : > { %v509_v29 = vsel %vm502_vm3, %v1163_v28, 0.0 }
 0x24c   : > { %510 = vadd.xlane.f32.xlu0 %v509_v29 }
 0x260   : > { %682 = vrot.lane.b32.xlu0 %v418_v13, %s1412_s18  ;;  %s1342_s18 = sshra.s32 %s912_s23, 4  ;;  %s1343_s18 = int_to_ptr.hbm [resolvable:$true] %s1342_s18 }
 0x261   : > { %s1344_s10 = scalar_lea.hbm %s1343_s18, 8  ;;  %p1349_p12 = scmp.lt.s32.totalorder %s1343_s18, %s1695_s8 }
 0x262   : > { %p1345_p1 = scmp.ne.s32.totalorder %s1343_s18, %s1344_s10  ;;  %p1350_p7 = scmp.lt.s32.totalorder %s1348_s15, %s1344_s10 }
 0x264   : > { %p1346_p3 = pnand %p1345_p1, %p1549_p5  ;;  %p1351_p8 = por %p1350_p7, %p1349_p12 }
 0x266   : > { %p1347_p4 = pneg %p1346_p3 }
 0x268   : > { %p1352_p9 = pnand %p1351_p8, %p1347_p4 }
 0x2ba   : > { %v586_v45 = vpop.xlane.xlu1 %585 }
 0x2bb   : > { %v587_v46 = vsub.f32 %v581_v26, %v586_v45 }
 0x2bd   : > { %v588_v48 = vmul.f32 1.442695, %v587_v46 }
 0x2bf   : > { %v511_v31 = vpop.xlane.xlu0 %510 }
 0x2c0   : > { %1164 = vrcp.f32 %v511_v31  ;;  %v523_v35 = vand.u32 2147483648, %v511_v31  ;;  %v521_v37 = vand.u32 2147483647, %v511_v31  ;;  %vm517_vm5 = vweird.f32 %v511_v31 }
 0x2c1   : > { %1166 = vpow2.f32 %v588_v48 }
 0x2c2   : > { %v524_v39 = vor.u32 1.1754944e-38, %v523_v35  ;;  %vm522_vm7 = vcmp.eq.f32.partialorder %v521_v37, 8.507059e+37 }
 0x2c6   : > { %v1165_v32 = vpop.eup %1164 }
 0x2c7   : > { %v513_v33 = vmul.f32 %v1165_v32, %v511_v31  ;;  %vm518_vm4 = vweird.f32 %v1165_v32  ;;  %v1167_v52 = vpop.eup %1166  ;;  %v761_v31 = vld [vmem:[#allocation10 + $0x10] sm:$0xff] }
 0x2c8   : > { %vm519_vm6 = vmor %vm517_vm5, %vm518_vm4  ;;  %v590_v53 = vsel %vm502_vm3, %v1167_v52, 0.0  ;;  %780 = vmatpush.msra.mxu2 %v761_v31 }
 0x2c9   : > { %v514_v34 = vsub.f32 1.0, %v513_v33 }
 0x2cb   : > { %v515_v36 = vmul.f32 %v1165_v32, %v514_v34 }
 0x2cd   : > { %v516_v38 = vadd.f32 %v1165_v32, %v515_v36 }
 0x2cf   : > { %v520_v40 = vsel %vm519_vm6, %v1165_v32, %v516_v38  ;;  %v865_v32 = vld [vmem:[#allocation10 + $0x18] sm:$0xff] }
 0x2d0   : > { %v525_v41 = vsel %vm522_vm7, %v524_v39, %v520_v40 }
 0x2d1   : > { %v526_v42 = vmul.f32 %v1163_v28, %v525_v41 }
 0x2d2   : > { %v683_v43 = vpop.permute.xlu0 %682 }
 0x2d3   : > { %1042 = vmatmul.msk.f32.vlgmr.msrb.gmra.mxu1 %vm502_vm3, %v526_v42  ;;  %1050 = vmatmul.msk.f32.vlgmr.msra.gmra.mxu3 %vm421_vm0, %v683_v43 }
 0x2d4   : > { %1054 = vmatpush.xpose.msk.msrb.mxu1 %vm421_vm0, %v789_v44 }
 0x350   : > { %v552_v47 = vpop.f32.mrf.mxu1 }
 0x351   : > { %1048 = vmatmul.msk.f32.vlgmr.msra.gmra.mxu1 %vm421_vm0, %v552_v47 }
 0x356   : > { %v707_v49 = vpop.f32.mrf.mxu3 }
 0x357   : > { %v710_v50 = vsel %vm502_vm3, %v707_v49, -inf }
 0x358   : > { %711 = vmax.xlane.f32.xlu2 %v710_v50 }
 0x359   : > { %1055 = vmatmul.msk.f32.vlgmr.msrb.gmra.mxu1 %vm421_vm0, %v787_v51 }
 0x360   : > { %591 = vadd.xlane.f32.xlu2 %v590_v53 }
 0x3cb   : > { %v712_v54 = vpop.xlane.xlu2 %711 }
 0x3cc   : > { %v713_v55 = vsub.f32 %v707_v49, %v712_v54 }
 0x3ce   : > { %v714_v56 = vmul.f32 1.442695, %v713_v55  ;;  %v1630_v57 = vpop.f32.mrf.mxu1 }
 0x3d0   : > { %1168 = vpow2.f32 %v714_v56 }
 0x3d3   : > { %v592_v62 = vpop.xlane.xlu2 %591 }
 0x3d4   : > { %1170 = vrcp.f32 %v592_v62  ;;  %v604_v13 = vand.u32 2147483648, %v592_v62  ;;  %vm598_vm9 = vweird.f32 %v592_v62  ;;  %v602_v14 = vand.u32 2147483647, %v592_v62 }
 0x3d6   : > { %v1169_v58 = vpop.eup %1168  ;;  %v811_v59 = vpop.f32.mrf.mxu1  ;;  %v605_v18 = vor.u32 1.1754944e-38, %v604_v13  ;;  %vm603_vm11 = vcmp.eq.f32.partialorder %v602_v14, 8.507059e+37 }
 0x3d7   : > { %v814_v60 = vsel %vm502_vm3, %v811_v59, -inf  ;;  %v716_v61 = vsel %vm502_vm3, %v1169_v58, 0.0 }
 0x3d8   : > { %815 = vmax.xlane.f32.xlu0 %v814_v60  ;;  %717 = vadd.xlane.f32.xlu1 %v716_v61 }
 0x3da   : > { %v1171_v63 = vpop.eup %1170 }
 0x3db   : > { %v594_v2 = vmul.f32 %v1171_v63, %v592_v62  ;;  %vm599_vm8 = vweird.f32 %v1171_v63 }
 0x3dc   : > { %vm600_vm10 = vmor %vm598_vm9, %vm599_vm8 }
 0x3dd   : > { %v595_v5 = vsub.f32 1.0, %v594_v2 }
 0x3df   : > { %v596_v7 = vmul.f32 %v1171_v63, %v595_v5 }
 0x3e1   : > { %v597_v11 = vadd.f32 %v1171_v63, %v596_v7 }
 0x3e3   : > { %v601_v17 = vsel %vm600_vm10, %v1171_v63, %v597_v11 }
 0x3e4   : > { %v606_v19 = vsel %vm603_vm11, %v605_v18, %v601_v17 }
 0x3e5   : > { %v607_v24 = vmul.f32 %v1167_v52, %v606_v19  ;;  %v1161_v52 = vld [vmem:[%s1694_s7] ss:$0 sm:$0xff] }
 0x3ec   : > { %734 = vrot.lane.b32.xlu0 %v1607_v16, %s1414_s14 }
 0x3f1   : > { %608 = vrot.lane.b32.xlu1 %v1607_v16, %s1415_s16 }
 0x44b   : > { %v718_v0 = vpop.xlane.xlu1 %717  ;;  %v816_v1 = vpop.xlane.xlu0 %815 }
 0x44c   : > { %1172 = vrcp.f32 %v718_v0  ;;  %v817_v3 = vsub.f32 %v811_v59, %v816_v1  ;;  %v730_v21 = vand.u32 2147483648, %v718_v0  ;;  %vm724_vm13 = vweird.f32 %v718_v0 }
 0x44d   : > { %v728_v22 = vand.u32 2147483647, %v718_v0 }
 0x44e   : > { %v818_v4 = vmul.f32 1.442695, %v817_v3  ;;  %v731_v27 = vor.u32 1.1754944e-38, %v730_v21 }
 0x44f   : > { %vm729_vm15 = vcmp.eq.f32.partialorder %v728_v22, 8.507059e+37 }
 0x450   : > { %1174 = vpow2.f32 %v818_v4 }
 0x452   : > { %v1173_v6 = vpop.eup %1172 }
 0x453   : > { %v720_v8 = vmul.f32 %v1173_v6, %v718_v0  ;;  %vm725_vm12 = vweird.f32 %v1173_v6 }
 0x454   : > { %vm726_vm14 = vmor %vm724_vm13, %vm725_vm12 }
 0x455   : > { %v721_v12 = vsub.f32 1.0, %v720_v8 }
 0x456   : > { %v1175_v9 = vpop.eup %1174 }
 0x457   : > { %v820_v10 = vsel %vm502_vm3, %v1175_v9, 0.0  ;;  %v722_v15 = vmul.f32 %v1173_v6, %v721_v12 }
 0x458   : > { %821 = vadd.xlane.f32.xlu2 %v820_v10 }
 0x459   : > { %v723_v20 = vadd.f32 %v1173_v6, %v722_v15 }
 0x45b   : > { %v727_v25 = vsel %vm726_vm14, %v1173_v6, %v723_v20 }
 0x45c   : > { %v732_v28 = vsel %vm729_vm15, %v731_v27, %v727_v25 }
 0x45d   : > { %v733_v29 = vmul.f32 %v1169_v58, %v732_v28 }
 0x45e   : > { %v735_v26 = vpop.permute.xlu0 %734 }
 0x463   : > { %v609_v23 = vpop.permute.xlu1 %608 }
 0x464   : > { %1045 = vmatpush.msk.msrb.mxu0 %vm532_vm2, %v609_v23 }
 0x465   : > { %1046 = vmatmul.msk.f32.vlgmr.msrb.gmra.mxu0 %vm502_vm3, %v607_v24 }
 0x466   : > { %1051 = vmatpush.msk.msra.mxu0 %vm532_vm2, %v735_v26 }
 0x468   : > { %884 = vmatpush.msrb.mxu0 %v865_v32 }
 0x46d   : > { %1052 = vmatmul.msk.f32.vlgmr.msra.gmra.mxu0 %vm502_vm3, %v733_v29 }
 0x470   : > { %838 = vrot.lane.b32.xlu2 %v1607_v16, %s1416_s11 }
 0x4cb   : > { %v822_v33 = vpop.xlane.xlu2 %821 }
 0x4cc   : > { %1176 = vrcp.f32 %v822_v33  ;;  %v834_v38 = vand.u32 2147483648, %v822_v33  ;;  %v832_v40 = vand.u32 2147483647, %v822_v33  ;;  %vm828_vm5 = vweird.f32 %v822_v33 }
 0x4ce   : > { %v835_v16 = vor.u32 1.1754944e-38, %v834_v38  ;;  %vm833_vm7 = vcmp.eq.f32.partialorder %v832_v40, 8.507059e+37 }
 0x4d2   : > { %v1177_v34 = vpop.eup %1176 }
 0x4d3   : > { %v824_v35 = vmul.f32 %v1177_v34, %v822_v33  ;;  %v839_v36 = vpop.permute.xlu2 %838  ;;  %vm829_vm4 = vweird.f32 %v1177_v34 }
 0x4d4   : > { %1056 = vmatpush.msk.msrb.mxu3 %vm532_vm2, %v839_v36  ;;  %vm830_vm6 = vmor %vm828_vm5, %vm829_vm4 }
 0x4d5   : > { %v825_v37 = vsub.f32 1.0, %v824_v35 }
 0x4d7   : > { %v826_v39 = vmul.f32 %v1177_v34, %v825_v37 }
 0x4d9   : > { %v827_v41 = vadd.f32 %v1177_v34, %v826_v39 }
 0x4db   : > { %v831_v42 = vsel %vm830_vm6, %v1177_v34, %v827_v41 }
 0x4dc   : > { %v836_v43 = vsel %vm833_vm7, %v835_v16, %v831_v42 }
 0x4dd   : > { %v837_v44 = vmul.f32 %v1175_v9, %v836_v43 }
 0x4df   : > { %1057 = vmatmul.msk.f32.vlgmr.msrb.gmra.mxu3 %vm502_vm3, %v837_v44 }
 0x4e2   : > { %v632_v45 = vpop.f32.mrf.mxu0 }
 0x4e3   : > { %1047 = vmatmul.msk.f32.vlgmr.msrb.gmra.mxu2 %vm421_vm0, %v632_v45 }
 0x4ea   : > { %v758_v46 = vpop.f32.mrf.mxu0 }
 0x4eb   : > { %1053 = vmatmul.msk.f32.vlgmr.msra.gmra.mxu2 %vm421_vm0, %v758_v46 }
 0x562   : > { %v862_v47 = vpop.f32.mrf.mxu3 }
 0x563   : > { %1058 = vmatmul.msk.f32.vlgmr.msrb.gmra.mxu0 %vm421_vm0, %v862_v47 }
 0x566   : > { %v656_v48 = vpop.f32.mrf.mxu2 }
 0x567   : > { %v680_v50 = vadd.f32 %v1630_v57, %v656_v48 }
 0x56e   : > { %v782_v49 = vpop.f32.mrf.mxu2 }
 0x56f   : > { %v785_v51 = vadd.f32 %v782_v49, %v680_v50 }
 0x5e0   : > { %v886_v53 = vpop.f32.mrf.mxu0 }
 0x5e1   : > { %v889_v54 = vadd.f32 %v886_v53, %v785_v51 }
 0x5e3   : > { %v894_v55 = vadd.f32 %v1161_v52, %v889_v54 }
 0x5e5   : > { %895 = vst.msk [vmem:[%s386_s19] sm:$0xff] %vm396_vm1, %v894_v55 }
 0x5e6   : > { %1355 = shalt.err (!%p1352_p9)
}
 0x5e7   : > { %1081 = dma.vmem_to_hbm [thread:$0]  (%p1549_p5), %s910_s21, 128, %s912_s23, %s897_s12  }
 0x5e8 PF: > { %s923_s25 = sand.u32 1, %s1390_s27   ;;  %p1709_p10 = scmp.ge.s32.totalorder %s1402_s30, 2 }
 0x5e9   : > { %s924_s17 = scalar_lea.sflag [#allocation4], %s923_s25 }
 0x5ea   : > { %p1101_p13 = pnand %p1709_p10, %p1553_p6 }
 0x5ec   : > { %p1102_p11 = pneg %p1101_p13 }
 0x5ee   : > { %1385 = dma.done.wait (%p1102_p11), %s924_s17, 128  }
 0x5ef   : > { %1387 = vsyncadd (%p1102_p11), %s924_s17, 4294967168  ;;  %p23_p0 = scmp.ge.s32.totalorder %s1523_s20, 4   ;;  %s1710_s27 = smov %s1394_s28 }
 0x5f0   : > { %s1711_s28 = smov %s1398_s29  ;;  %s1712_s29 = smov %s1534_s22 }
 0x5f1   : > { %s1713_s30 = smov %s1523_s20  ;;  %25 = sbr.rel (!%p23_p0) target bundleno = 11 (0xb), region = 113 }
 0x5f6   :  { %930 = vsyncpa [#allocation3], 1 }
 0x5f7   :  { %932 = vsyncpa [#allocation3 + $0x1], 1 }
 0x5f8   :  { %933 = vsyncpa [#allocation6], 1 }
 0x5f9   :  { %934 = vsyncpa [#allocation9], 1 }
 0x5fa   :  { %935 = vsyncpa [#allocation4], 1 }
 0x5fb   :  { %937 = vsyncpa [#allocation4 + $0x1], 1 }

</bundles_post_ra>
